<compile_context>
chip_gen: v7x
topology: tpu7x:2x2x1
jax: 0.10.0
libtpu: 0.0.40
codegen_flags: <defaults>
</compile_context>

<pallas_src>
import jax
import jax.numpy as jnp
from jax import lax
from jax.experimental import pallas as pl
from jax.experimental.pallas import tpu as pltpu
import numpy as np

# ---- static config (small synthetic shapes) ----
B = 2            # batch
S = 8            # input sequence length
SEQ_LEN = 12     # Stem.seq_len (output padded to this)
C = 4            # number of continuous features
H = 8            # num_embeddings_hidden (per continuous channel)
K = 3            # chosen conv kernel size (LayerChoice branch)
PAD = K // 2
CARD = [7, 11]   # categorical cardinalities -> tables of size CARD[i] + 1
V0 = CARD[0] + 1
V1 = CARD[1] + 1
E = 8            # cat_embeddings_hidden (explicit, not "auto")
F_OUT = 2 * E + C * H          # 48 logical feature columns
KC = V0 + V1 + C * K + 1       # 33 live contraction lanes (+1 = ones/bias column)
LANES = 128                    # lane-padded contraction dim of A / rows of W
F_PAD = 128                    # lane-padded output feature dim
ROWS = B * SEQ_LEN             # 24 output rows (multiple of 8 -> aligned stores)
EPS = 1e-5


def stem_kernel(cat_ref, x_ref, bn_ref, w_ref, out_ref, a_ref):
    # ---- pre-zero the fused-activation scratch (covers pad rows + unused lanes)
    a_ref[...] = jnp.zeros_like(a_ref)

    # ---- one-hot blocks for both categorical features (int32 compares) ----
    idx = cat_ref[...]                                            # (ROWS, 2) int32; pad rows = -1
    oh0 = (lax.broadcasted_iota(jnp.int32, (ROWS, V0), 1)
           == idx[:, 0:1]).astype(jnp.float32)                    # (ROWS, V0)
    oh1 = (lax.broadcasted_iota(jnp.int32, (ROWS, V1), 1)
           == idx[:, 1:2]).astype(jnp.float32)                    # (ROWS, V1)
    a_ref[:, 0:V0] = oh0
    a_ref[:, V0:V0 + V1] = oh1

    # ---- BatchNorm1d affine (inference), pre-conv so zero pads stay post-BN ----
    xn = x_ref[...] * bn_ref[0:1, :] + bn_ref[1:2, :]             # (B*S, C)

    # ---- im2col via static shifted slice writes (conv zero-padding comes from
    #      the pre-zeroed scratch rows; no concat / no materialized xpad) ----
    base = V0 + V1
    for b in range(B):          # static Python loop, B is tiny
        r0 = b * SEQ_LEN        # output-row base for batch b
        s0 = b * S              # xn-row base for batch b
        # tap k=0 (left neighbour):  out row s uses xn[s-1] -> rows 1..S-1
        a_ref[r0 + 1:r0 + S, base:base + C] = xn[s0:s0 + S - 1, :]
        # tap k=1 (center):          out row s uses xn[s]   -> rows 0..S-1
        a_ref[r0:r0 + S, base + C:base + 2 * C] = xn[s0:s0 + S, :]
        # tap k=2 (right neighbour): out row s uses xn[s+1] -> rows 0..S-2
        a_ref[r0:r0 + S - 1, base + 2 * C:base + 3 * C] = xn[s0 + 1:s0 + S, :]
        # ones / bias column only on valid rows; padded rows keep zero bias
        a_ref[r0:r0 + S, KC - 1:KC] = jnp.ones((S, 1), jnp.float32)

    # ---- one fused MXU matmul and ONE unmasked full-block lane-dense store ----
    out_ref[...] = jnp.dot(a_ref[...], w_ref[...],
                           preferred_element_type=jnp.float32)


def _build_fused_weight(tab0, tab1, w3, b2):
    """[LANES, F_PAD] fused weight: embedding tables in their column blocks,
    block-diagonal grouped-conv taps, conv bias in the ones row; everything
    outside the live (KC x F_OUT) region is zero (lane padding)."""
    W = jnp.zeros((LANES, F_PAD), jnp.float32)
    W = W.at[0:V0, 0:E].set(tab0.astype(jnp.float32))
    W = W.at[V0:V0 + V1, E:2 * E].set(tab1.astype(jnp.float32))
    eyeC = jnp.eye(C, dtype=jnp.float32)
    # blk[k*C + c, c*H + h] = w3[c, h, k]
    blk = jnp.einsum('chk,cd->kcdh', w3, eyeC).reshape(K * C, C * H)
    W = W.at[V0 + V1:V0 + V1 + K * C, 2 * E:2 * E + C * H].set(blk)
    W = W.at[KC - 1, 2 * E:2 * E + C * H].set(b2.reshape(C * H))
    return W


def stem_forward(cat0, cat1, tab0, tab1, xc,
                 bn_gamma, bn_beta, bn_mean, bn_var, conv_w, conv_b):
    # fold BN running stats to an affine (scale, shift) pair
    inv_std = 1.0 / jnp.sqrt(bn_var + EPS)
    scale = (bn_gamma * inv_std).astype(jnp.float32)
    shift = (bn_beta - bn_mean * bn_gamma * inv_std).astype(jnp.float32)
    bn = jnp.stack([scale, shift], axis=0)                        # (2, C)

    # categorical indices, padded along the sequence to SEQ_LEN with -1 sentinel
    # (-1 matches no iota value -> all-zero one-hot -> zero output row)
    cat = jnp.stack([cat0, cat1], axis=-1).astype(jnp.int32)      # (B, S, 2)
    cat = jnp.pad(cat, ((0, 0), (0, SEQ_LEN - S), (0, 0)), constant_values=-1)
    cat2d = cat.reshape(ROWS, 2)                                  # (B*SEQ_LEN, 2)

    # continuous features as 2D (B*S, C) — no in-kernel 3D reshapes/transposes
    x2d = jnp.transpose(xc, (0, 2, 1)).reshape(B * S, C).astype(jnp.float32)

    w3 = conv_w.reshape(C, H, K).astype(jnp.float32)   # torch weight [C*H, 1, K]
    b2 = conv_b.reshape(C, H).astype(jnp.float32)
    w_fused = _build_fused_weight(tab0, tab1, w3, b2)             # (LANES, F_PAD)

    out2d = pl.pallas_call(
        stem_kernel,
        out_shape=jax.ShapeDtypeStruct((ROWS, F_PAD), jnp.float32),
        grid=(1,),
        in_specs=[
            pl.BlockSpec((ROWS, 2), lambda i: (0, 0)),            # cat indices
            pl.BlockSpec((B * S, C), lambda i: (0, 0)),           # continuous
            pl.BlockSpec((2, C), lambda i: (0, 0)),               # bn scale/shift
            pl.BlockSpec((LANES, F_PAD), lambda i: (0, 0)),       # fused weight
        ],
        out_specs=pl.BlockSpec((ROWS, F_PAD), lambda i: (0, 0)),
        scratch_shapes=[pltpu.VMEM((ROWS, LANES), jnp.float32)],  # fused A matrix
        compiler_params=pltpu.CompilerParams(dimension_semantics=("arbitrary",)),
    )(cat2d, x2d, bn, w_fused)

    # lane-dense kernel output; restore logical layout outside the kernel
    return out2d.reshape(B, SEQ_LEN, F_PAD)[:, :, :F_OUT]


if __name__ == "__main__":
    key = jax.random.PRNGKey(0)
    ks = jax.random.split(key, 10)
    # batch dict equivalent: two categorical features and C continuous features
    cat0 = jax.random.randint(ks[0], (B, S), 0, CARD[0] + 1)
    cat1 = jax.random.randint(ks[1], (B, S), 0, CARD[1] + 1)
    xc = jax.random.normal(ks[2], (B, C, S), jnp.float32)          # stacked continuous
    # deterministic parameter init (synthetic — no checkpoint load)
    tab0 = jax.random.normal(ks[3], (CARD[0] + 1, E), jnp.float32)
    tab1 = jax.random.normal(ks[4], (CARD[1] + 1, E), jnp.float32)
    bn_gamma = 1.0 + 0.1 * jax.random.normal(ks[5], (C,), jnp.float32)
    bn_beta = 0.1 * jax.random.normal(ks[6], (C,), jnp.float32)
    bn_mean = 0.1 * jax.random.normal(ks[7], (C,), jnp.float32)
    bn_var = jax.random.uniform(ks[8], (C,), jnp.float32, minval=0.5, maxval=1.5)
    conv_w = 0.1 * jax.random.normal(ks[9], (C * H, 1, K), jnp.float32)
    conv_b = jnp.linspace(-0.1, 0.1, C * H).astype(jnp.float32)

    out = jax.block_until_ready(
        stem_forward(cat0, cat1, tab0, tab1, xc,
                     bn_gamma, bn_beta, bn_mean, bn_var, conv_w, conv_b))

    # ---- pure-JAX reference (semantics check) ----
    e0 = tab0[cat0]                                                 # [B,S,E]
    e1 = tab1[cat1]
    scl = bn_gamma / jnp.sqrt(bn_var + EPS)
    xn = (xc - bn_mean[None, :, None]) * scl[None, :, None] + bn_beta[None, :, None]
    xpad = jnp.pad(xn, ((0, 0), (0, 0), (PAD, PAD)))
    w3 = conv_w.reshape(C, H, K)
    acc = jnp.zeros((B, C, H, S), jnp.float32)
    for k in range(K):
        acc = acc + xpad[:, :, None, k:k + S] * w3[None, :, :, k:k + 1]
    acc = acc + conv_b.reshape(1, C, H, 1)
    lin = jnp.transpose(acc.reshape(B, C * H, S), (0, 2, 1))        # [B,S,C*H]
    feat = jnp.concatenate([e0, e1, lin], axis=2)
    ref = jnp.pad(feat, ((0, 0), (0, SEQ_LEN - S), (0, 0)))

    np.testing.assert_allclose(np.asarray(out), np.asarray(ref), rtol=1e-5, atol=1e-5)
    print("KERNEL_OK")
</pallas_src>

<mosaic_0001>
module attributes {stable_mosaic.version = 11 : i64} {
  func.func @stem_kernel(%arg0: i32, %arg1: memref<24x2xi32, #tpu.memory_space<vmem>>, %arg2: memref<16x4xf32, #tpu.memory_space<vmem>>, %arg3: memref<2x4xf32, #tpu.memory_space<vmem>>, %arg4: memref<128x128xf32, #tpu.memory_space<vmem>>, %arg5: memref<24x128xf32, #tpu.memory_space<vmem>>, %arg6: memref<24x128xf32, #tpu.memory_space<vmem>>) attributes {dimension_semantics = [#tpu.dimension_semantics<arbitrary>], iteration_bounds = array<i64: 1>, scalar_prefetch = 0 : i64, scratch_operands = 1 : i64, tpu.core_type = #tpu.core_type<tc>, window_params = [{pipeline_mode = #tpu.pipeline_mode<synchronous>, transform_indices = @transform_0, window_bounds = array<i64: 24, 2>}, {pipeline_mode = #tpu.pipeline_mode<synchronous>, transform_indices = @transform_1, window_bounds = array<i64: 16, 4>}, {pipeline_mode = #tpu.pipeline_mode<synchronous>, transform_indices = @transform_2, window_bounds = array<i64: 2, 4>}, {pipeline_mode = #tpu.pipeline_mode<synchronous>, transform_indices = @transform_3, window_bounds = array<i64: 128, 128>}, {pipeline_mode = #tpu.pipeline_mode<synchronous>, transform_indices = @transform_4, window_bounds = array<i64: 24, 128>}]} {
    %cst = arith.constant 0.000000e+00 : f32
    %0 = vector.broadcast %cst : f32 to vector<24x128xf32>
    %c0 = arith.constant 0 : index
    %c0_0 = arith.constant 0 : index
    %1 = vector.load %arg6[%c0, %c0_0] : memref<24x128xf32, #tpu.memory_space<vmem>>, vector<24x128xf32>
    tpu.vector_store %arg6[%c0, %c0_0], %0 {strides = array<i32>} : memref<24x128xf32, #tpu.memory_space<vmem>>, vector<24x128xf32>,
    %c0_1 = arith.constant 0 : index
    %c0_2 = arith.constant 0 : index
    %2 = vector.load %arg1[%c0_1, %c0_2] : memref<24x2xi32, #tpu.memory_space<vmem>>, vector<24x2xi32>
    %3 = tpu.iota {dimensions = array<i32: 1>} : vector<24x8xi32>
    %4 = vector.extract_strided_slice %2 {offsets = [0, 0], sizes = [24, 1], strides = [1, 1]} : vector<24x2xi32> to vector<24x1xi32>
    %5 = vector.broadcast %4 : vector<24x1xi32> to vector<24x8xi32>
    %6 = arith.cmpi eq, %3, %5 : vector<24x8xi32>
    %7 = arith.extui %6 : vector<24x8xi1> to vector<24x8xi32>
    %8 = arith.sitofp %7 : vector<24x8xi32> to vector<24x8xf32>
    %9 = tpu.iota {dimensions = array<i32: 1>} : vector<24x12xi32>
    %10 = vector.extract_strided_slice %2 {offsets = [0, 1], sizes = [24, 1], strides = [1, 1]} : vector<24x2xi32> to vector<24x1xi32>
    %11 = vector.broadcast %10 : vector<24x1xi32> to vector<24x12xi32>
    %12 = arith.cmpi eq, %9, %11 : vector<24x12xi32>
    %13 = arith.extui %12 : vector<24x12xi1> to vector<24x12xi32>
    %14 = arith.sitofp %13 : vector<24x12xi32> to vector<24x12xf32>
    %c0_3 = arith.constant 0 : index
    %c0_4 = arith.constant 0 : index
    %15 = vector.load %arg6[%c0_3, %c0_4] : memref<24x128xf32, #tpu.memory_space<vmem>>, vector<24x8xf32>
    tpu.vector_store %arg6[%c0_3, %c0_4], %8 {strides = array<i32>} : memref<24x128xf32, #tpu.memory_space<vmem>>, vector<24x8xf32>,
    %c0_5 = arith.constant 0 : index
    %c8 = arith.constant 8 : index
    %16 = vector.load %arg6[%c0_5, %c8] : memref<24x128xf32, #tpu.memory_space<vmem>>, vector<24x12xf32>
    tpu.vector_store %arg6[%c0_5, %c8], %14 {strides = array<i32>} : memref<24x128xf32, #tpu.memory_space<vmem>>, vector<24x12xf32>,
    %c0_6 = arith.constant 0 : index
    %c0_7 = arith.constant 0 : index
    %17 = vector.load %arg2[%c0_6, %c0_7] : memref<16x4xf32, #tpu.memory_space<vmem>>, vector<16x4xf32>
    %c0_8 = arith.constant 0 : index
    %c0_9 = arith.constant 0 : index
    %18 = vector.load %arg3[%c0_8, %c0_9] : memref<2x4xf32, #tpu.memory_space<vmem>>, vector<1x4xf32>
    %19 = vector.broadcast %18 : vector<1x4xf32> to vector<16x4xf32>
    %20 = arith.mulf %17, %19 : vector<16x4xf32>
    %c1 = arith.constant 1 : index
    %c0_10 = arith.constant 0 : index
    %21 = vector.load %arg3[%c1, %c0_10] : memref<2x4xf32, #tpu.memory_space<vmem>>, vector<1x4xf32>
    %22 = vector.broadcast %21 : vector<1x4xf32> to vector<16x4xf32>
    %23 = arith.addf %20, %22 : vector<16x4xf32>
    %24 = vector.extract_strided_slice %23 {offsets = [0, 0], sizes = [7, 4], strides = [1, 1]} : vector<16x4xf32> to vector<7x4xf32>
    %c1_11 = arith.constant 1 : index
    %c20 = arith.constant 20 : index
    %25 = vector.load %arg6[%c1_11, %c20] : memref<24x128xf32, #tpu.memory_space<vmem>>, vector<7x4xf32>
    tpu.vector_store %arg6[%c1_11, %c20], %24 {strides = array<i32>} : memref<24x128xf32, #tpu.memory_space<vmem>>, vector<7x4xf32>,
    %26 = vector.extract_strided_slice %23 {offsets = [0, 0], sizes = [8, 4], strides = [1, 1]} : vector<16x4xf32> to vector<8x4xf32>
    %c0_12 = arith.constant 0 : index
    %c24 = arith.constant 24 : index
    %27 = vector.load %arg6[%c0_12, %c24] : memref<24x128xf32, #tpu.memory_space<vmem>>, vector<8x4xf32>
    tpu.vector_store %arg6[%c0_12, %c24], %26 {strides = array<i32>} : memref<24x128xf32, #tpu.memory_space<vmem>>, vector<8x4xf32>,
    %28 = vector.extract_strided_slice %23 {offsets = [1, 0], sizes = [7, 4], strides = [1, 1]} : vector<16x4xf32> to vector<7x4xf32>
    %c0_13 = arith.constant 0 : index
    %c28 = arith.constant 28 : index
    %29 = vector.load %arg6[%c0_13, %c28] : memref<24x128xf32, #tpu.memory_space<vmem>>, vector<7x4xf32>
    tpu.vector_store %arg6[%c0_13, %c28], %28 {strides = array<i32>} : memref<24x128xf32, #tpu.memory_space<vmem>>, vector<7x4xf32>,
    %cst_14 = arith.constant 1.000000e+00 : f32
    %30 = vector.broadcast %cst_14 : f32 to vector<8x1xf32>
    %c0_15 = arith.constant 0 : index
    %c32 = arith.constant 32 : index
    %31 = vector.load %arg6[%c0_15, %c32] : memref<24x128xf32, #tpu.memory_space<vmem>>, vector<8x1xf32>
    tpu.vector_store %arg6[%c0_15, %c32], %30 {strides = array<i32>} : memref<24x128xf32, #tpu.memory_space<vmem>>, vector<8x1xf32>,
    %32 = vector.extract_strided_slice %23 {offsets = [8, 0], sizes = [7, 4], strides = [1, 1]} : vector<16x4xf32> to vector<7x4xf32>
    %c13 = arith.constant 13 : index
    %c20_16 = arith.constant 20 : index
    %33 = vector.load %arg6[%c13, %c20_16] : memref<24x128xf32, #tpu.memory_space<vmem>>, vector<7x4xf32>
    tpu.vector_store %arg6[%c13, %c20_16], %32 {strides = array<i32>} : memref<24x128xf32, #tpu.memory_space<vmem>>, vector<7x4xf32>,
    %34 = vector.extract_strided_slice %23 {offsets = [8, 0], sizes = [8, 4], strides = [1, 1]} : vector<16x4xf32> to vector<8x4xf32>
    %c12 = arith.constant 12 : index
    %c24_17 = arith.constant 24 : index
    %35 = vector.load %arg6[%c12, %c24_17] : memref<24x128xf32, #tpu.memory_space<vmem>>, vector<8x4xf32>
    tpu.vector_store %arg6[%c12, %c24_17], %34 {strides = array<i32>} : memref<24x128xf32, #tpu.memory_space<vmem>>, vector<8x4xf32>,
    %36 = vector.extract_strided_slice %23 {offsets = [9, 0], sizes = [7, 4], strides = [1, 1]} : vector<16x4xf32> to vector<7x4xf32>
    %c12_18 = arith.constant 12 : index
    %c28_19 = arith.constant 28 : index
    %37 = vector.load %arg6[%c12_18, %c28_19] : memref<24x128xf32, #tpu.memory_space<vmem>>, vector<7x4xf32>
    tpu.vector_store %arg6[%c12_18, %c28_19], %36 {strides = array<i32>} : memref<24x128xf32, #tpu.memory_space<vmem>>, vector<7x4xf32>,
    %cst_20 = arith.constant 1.000000e+00 : f32
    %38 = vector.broadcast %cst_20 : f32 to vector<8x1xf32>
    %c12_21 = arith.constant 12 : index
    %c32_22 = arith.constant 32 : index
    %39 = vector.load %arg6[%c12_21, %c32_22] : memref<24x128xf32, #tpu.memory_space<vmem>>, vector<8x1xf32>
    tpu.vector_store %arg6[%c12_21, %c32_22], %38 {strides = array<i32>} : memref<24x128xf32, #tpu.memory_space<vmem>>, vector<8x1xf32>,
    %c0_23 = arith.constant 0 : index
    %c0_24 = arith.constant 0 : index
    %40 = vector.load %arg6[%c0_23, %c0_24] : memref<24x128xf32, #tpu.memory_space<vmem>>, vector<24x128xf32>
    %c0_25 = arith.constant 0 : index
    %c0_26 = arith.constant 0 : index
    %41 = vector.load %arg4[%c0_25, %c0_26] : memref<128x128xf32, #tpu.memory_space<vmem>>, vector<128x128xf32>
    %cst_27 = arith.constant dense<0.000000e+00> : vector<24x128xf32>
    %42 = tpu.matmul %40, %41, %cst_27 {dimension_numbers = #tpu.dot_dimension_numbers<[1], [0], [0], [1], [0, 0, 1, 1], [], []>} : vector<24x128xf32>, vector<128x128xf32>, vector<24x128xf32> -> vector<24x128xf32>
    %c0_28 = arith.constant 0 : index
    %c0_29 = arith.constant 0 : index
    %43 = vector.load %arg5[%c0_28, %c0_29] : memref<24x128xf32, #tpu.memory_space<vmem>>, vector<24x128xf32>
    tpu.vector_store %arg5[%c0_28, %c0_29], %42 {strides = array<i32>} : memref<24x128xf32, #tpu.memory_space<vmem>>, vector<24x128xf32>,
    return
  }
  func.func @transform_0(%arg0: i32) -> (i32, i32) {
    %c0_i32 = arith.constant 0 : i32
    %c0_i32_0 = arith.constant 0 : i32
    %c0_i32_1 = arith.constant 0 : i32
    return %c0_i32, %c0_i32_0 : i32, i32
  }
  func.func @transform_1(%arg0: i32) -> (i32, i32) {
    %c0_i32 = arith.constant 0 : i32
    %c0_i32_0 = arith.constant 0 : i32
    %c0_i32_1 = arith.constant 0 : i32
    return %c0_i32, %c0_i32_0 : i32, i32
  }
  func.func @transform_2(%arg0: i32) -> (i32, i32) {
    %c0_i32 = arith.constant 0 : i32
    %c0_i32_0 = arith.constant 0 : i32
    %c0_i32_1 = arith.constant 0 : i32
    return %c0_i32, %c0_i32_0 : i32, i32
  }
  func.func @transform_3(%arg0: i32) -> (i32, i32) {
    %c0_i32 = arith.constant 0 : i32
    %c0_i32_0 = arith.constant 0 : i32
    %c0_i32_1 = arith.constant 0 : i32
    return %c0_i32, %c0_i32_0 : i32, i32
  }
  func.func @transform_4(%arg0: i32) -> (i32, i32) {
    %c0_i32 = arith.constant 0 : i32
    %c0_i32_0 = arith.constant 0 : i32
    %c0_i32_1 = arith.constant 0 : i32
    return %c0_i32, %c0_i32_0 : i32, i32
  }
}

</mosaic_0001>

<bundles_post_ra>
// kernel: tpu_custom_call.1
= control target key start
LH: loop header
LB: loop body
LE: loop exit
PB: predicated region body
PF: predicated region fallthrough
CT: control target
= control target key end

     0   :  { %9 = vsyncpa [#allocation4], 0  ;;  %s558_s0 = inlined_call_operand.vmem [shape: s32[24,2], index: 0, kind: input, shape index: {}]   ;;  %s559_s1 = inlined_call_operand.vmem [shape: f32[16,4], index: 1, kind: input, shape index: {}]   ;;  %s560_s2 = inlined_call_operand.vmem [shape: f32[2,4], index: 2, kind: input, shape index: {}]   ;;  %s561_s3 = inlined_call_operand.hbm [shape: f32[128,128], index: 3, kind: input, shape index: {}]   ;;  %s562_s4 = inlined_call_operand.hbm [shape: f32[24,128], index: 4, kind: output, shape index: {}]  }
   0x1   :  { %10 = vsyncpa [#allocation5], 0  ;;  %s442_s15 = smov [#allocation3]   ;;  %s394_s19 = scalar_lea.hbm %s561_s3, 2048 }
   0x2   :  { %s22_s16 = sshll.u32 %s442_s15, 4  ;;  %p395_p0 = scmp.ne.s32.totalorder %s561_s3, %s394_s19  ;;  %s23_s16 = int_to_ptr.vmem [resolvable:$true] %s22_s16 }
   0x3   :  { %p398_p1 = scmp.lt.u32.totalorder %s394_s19, %s561_s3 }
   0x5   :  { %p400_p2 = pnand %p398_p1, %p395_p0 }
   0x7   :  { %403 = shalt.err (!%p400_p2)
}
   0x8   :  { %s404_s24 = scalar_lea.vmem %s23_s16, 2048  ;;  %p409_p4 = scmp.lt.s32.totalorder %s23_s16, %s23_s16 }
   0x9   :  { %p405_p3 = scmp.ne.s32.totalorder %s23_s16, %s404_s24  ;;  %p410_p5 = scmp.lt.s32.totalorder %s404_s24, %s404_s24 }
   0xb   :  { %p411_p6 = por %p410_p5, %p409_p4 }
   0xd   :  { %p412_p7 = pnand %p411_p6, %p405_p3 }
   0xf   :  { %415 = shalt.err (!%p412_p7)
}
  0x10   :  { %s443_s25 = smov 128   ;;  %s444_s26 = smov 8  }
  0x11   :  { %28 = dma.hbm_to_vmem [thread:$0]  %s561_s3, 2048, %s23_s16, [#allocation4], %s443_s25, %s443_s25, %s444_s26  }
  0x12   :  { %438 = dma.done.wait [#allocation4], 2048  }
  0x13   :  { %439 = vsyncadd [#allocation4], 4294965248  ;;  %v445_v0 = vmov 1   ;;  %v446_v1 = vmov 0.0   ;;  %v36_v2 = vld [vmem:[%s558_s0 + $0x8] sm:$0xff]  ;;  %v35_v3 = vld [vmem:[%s558_s0] sm:$0xff]  ;;  %v38_v30 = vlaneseq }
  0x14   :  { %384 = vset.pattern.permute.xlu0 %v445_v0  ;;  %385 = vset.pattern.permute.xlu1 %v445_v0  ;;  %32 = vst [vmem:[#allocation2] sm:$0xff] %v446_v1  ;;  %33 = vst [vmem:[#allocation2 + $0x8] sm:$0xff] %v446_v1  ;;  %v37_v4 = vld [vmem:[%s558_s0 + $0x10] sm:$0xff]  ;;  %v97_v5 = vld [vmem:[%s559_s1 + $0x8] sm:$0xff]  ;;  %v447_v7 = vmov 0   ;;  %s448_s15 = smov 24  }
  0x15   :  { %34 = vst [vmem:[#allocation2 + $0x10] sm:$0xff] %v446_v1  ;;  %62 = vperm.xlu0 %384, %v36_v2   ;;  %59 = vperm.xlu1 %385, %v35_v3   ;;  %v269_v6 = vld [vmem:[%s560_s2] ss:$0 sm:$0xff]  ;;  %v270_v9 = vld [vmem:[%s560_s2 + $0x1] ss:$0 sm:$0xff]  ;;  %s449_s16 = smov 20  }
  0x16   :  { %v104_v8 = vmul.f32 %v269_v6, %v97_v5  ;;  %v96_v11 = vld [vmem:[%s559_s1] sm:$0xff]  ;;  %v147_v13 = vld [vmem:[#allocation3] sm:$0xff]  ;;  %v149_v15 = vld [vmem:[#allocation3 + $0x10] sm:$0xff]  ;;  %s450_s17 = smov 28   ;;  %v451_v17 = vmov 0.0|0.0   ;;  %v39_v34 = vand.u32 127, %v38_v30 }
  0x17   :  { %v103_v12 = vmul.f32 %v269_v6, %v96_v11  ;;  %v148_v14 = vld [vmem:[#allocation3 + $0x8] sm:$0xff]  ;;  %355 = vmatprep.subr.bf16.mxu1 %v451_v17  ;;  %v150_v19 = vld [vmem:[#allocation3 + $0x18] sm:$0xff]  ;;  %331 = vmatprep.subr.bf16.mxu0 %v451_v17  ;;  %v151_v21 = vld [vmem:[#allocation3 + $0x20] sm:$0xff]  ;;  %vm76_vm2 = vcmask 64512   ;;  %vm452_vm5 = vmmov 0   ;;  %vm92_vm8 = vcmask 162880  }
  0x18   :  { %v111_v10 = vadd.f32 %v270_v9, %v104_v8  ;;  %v332_v18 = vpack.c.bf16 %v148_v14, %v147_v13  ;;  %v335_v20 = vpack.c.bf16 %v150_v19, %v149_v15  ;;  %v152_v22 = vld [vmem:[#allocation3 + $0x28] sm:$0xff]  ;;  %v153_v24 = vld [vmem:[#allocation3 + $0x30] sm:$0xff]  ;;  %v154_v25 = vld [vmem:[#allocation3 + $0x38] sm:$0xff]  ;;  %325 = vmatprep.mubr.msk.f32.mxu1 %vm452_vm5, %v446_v1  ;;  %322 = vmatprep.mubr.msk.f32.mxu0 %vm452_vm5, %v446_v1  ;;  %vm116_vm9 = vcmask 194720   ;;  %s454_s1 = smov [#allocation6]  }
  0x19   :  { %65 = vperm.xlu0 %384, %v37_v4   ;;  %386 = vset.pattern.permute.xlu1 %v447_v7  ;;  %v520_v16 = vadd.f32 %v270_v9, %v103_v12  ;;  %v338_v23 = vpack.c.bf16 %v152_v22, %v151_v21  ;;  %v341_v26 = vpack.c.bf16 %v154_v25, %v153_v24  ;;  %v155_v27 = vld [vmem:[#allocation3 + $0x40] sm:$0xff]  ;;  %v156_v28 = vld [vmem:[#allocation3 + $0x48] sm:$0xff]  ;;  %v157_v31 = vld [vmem:[#allocation3 + $0x50] sm:$0xff]  ;;  %vm121_vm10 = vcmask 228544   ;;  %s251_s2 = sshll.u32 %s454_s1, 4  ;;  %s252_s2 = int_to_ptr.vmem [resolvable:$true] %s251_s2 }
  0x1a   :  { %44 = vperm.xlu1 %386, %v36_v2   ;;  %363 = vmatpush3.bf16.msra.mxu1 %v332_v18  ;;  %v344_v29 = vpack.c.bf16 %v156_v28, %v155_v27  ;;  %v158_v32 = vld [vmem:[#allocation3 + $0x58] sm:$0xff]  ;;  %v159_v36 = vld [vmem:[#allocation3 + $0x60] sm:$0xff]  ;;  %v160_v37 = vld [vmem:[#allocation3 + $0x68] sm:$0xff]  ;;  %vm126_vm11 = vcmask 261345   ;;  %vm128_vm12 = vcmask 269568   ;;  %v453_v62 = vmov 1.0   ;;  %p421_p9 = scmp.lt.s32.totalorder %s252_s2, %s252_s2 }
  0x1b   :  { %333 = vmatpush3.bf16.msra.mxu0 %v332_v18  ;;  %356 = vmatprep.subr.bf16.mxu1 %v451_v17  ;;  %v347_v33 = vpack.c.bf16 %v158_v32, %v157_v31  ;;  %v350_v39 = vpack.c.bf16 %v160_v37, %v159_v36  ;;  %v161_v41 = vld [vmem:[#allocation3 + $0x70] sm:$0xff]  ;;  %v162_v42 = vld [vmem:[#allocation3 + $0x78] sm:$0xff]  ;;  %s416_s18 = scalar_lea.vmem %s252_s2, 384 }
  0x1c   :  { %334 = vmatprep.subr.bf16.mxu0 %v451_v17  ;;  %v353_v44 = vpack.c.bf16 %v162_v42, %v161_v41  ;;  %p417_p8 = scmp.ne.s32.totalorder %s252_s2, %s416_s18  ;;  %p422_p10 = scmp.lt.s32.totalorder %s416_s18, %s416_s18 }
  0x1d   :  { %387 = vset.pattern.permute.xlu0 %v447_v7 }
  0x1e   :  { %41 = vperm.xlu1 %386, %v35_v3   ;;  %47 = vperm.xlu0 %387, %v37_v4   ;;  %p423_p11 = por %p422_p10, %p421_p9 }
  0x1f   :  { %364 = vmatpush3.bf16.msra.mxu1 %v335_v20  ;;  %336 = vmatpush3.bf16.msra.mxu0 %v335_v20 }
  0x20   :  { %357 = vmatprep.subr.bf16.mxu1 %v451_v17  ;;  %337 = vmatprep.subr.bf16.mxu0 %v451_v17  ;;  %p424_p12 = pnand %p423_p11, %p417_p8 }
  0x22   :  { %135 = vrot.lane.b32.xlu1 %v111_v10, %s448_s15  ;;  %131 = vrot.lane.b32.xlu0 %v111_v10, %s449_s16 }
  0x23   :  { %393 = vset.pattern.permute.xlu0 %v445_v0  ;;  %365 = vmatpush3.bf16.msra.mxu1 %v338_v23 }
  0x24   :  { %339 = vmatpush3.bf16.msra.mxu0 %v338_v23  ;;  %358 = vmatprep.subr.bf16.mxu1 %v451_v17 }
  0x25   :  { %340 = vmatprep.subr.bf16.mxu0 %v451_v17 }
  0x26   :  { %139 = vrot.lane.b32.xlu0 %v111_v10, %s450_s17 }
  0x27   :  { %366 = vmatpush3.bf16.msra.mxu1 %v341_v26 }
  0x28   :  { %342 = vmatpush3.bf16.msra.mxu0 %v341_v26  ;;  %359 = vmatprep.subr.bf16.mxu1 %v451_v17 }
  0x29   :  { %343 = vmatprep.subr.bf16.mxu0 %v451_v17 }
  0x2a   :  { %113 = vrot.lane.b32.xlu0 %v520_v16, %s449_s16 }
  0x2b   :  { %367 = vmatpush3.bf16.msra.mxu1 %v344_v29 }
  0x2c   :  { %345 = vmatpush3.bf16.msra.mxu0 %v344_v29  ;;  %360 = vmatprep.subr.bf16.mxu1 %v451_v17 }
  0x2d   :  { %346 = vmatprep.subr.bf16.mxu0 %v451_v17 }
  0x2e   :  { %123 = vrot.lane.b32.xlu0 %v520_v16, %s450_s17 }
  0x2f   :  { %368 = vmatpush3.bf16.msra.mxu1 %v347_v33 }
  0x30   :  { %348 = vmatpush3.bf16.msra.mxu0 %v347_v33  ;;  %361 = vmatprep.subr.bf16.mxu1 %v451_v17 }
  0x31   :  { %349 = vmatprep.subr.bf16.mxu0 %v451_v17 }
  0x33   :  { %369 = vmatpush3.bf16.msra.mxu1 %v350_v39 }
  0x34   :  { %351 = vmatpush3.bf16.msra.mxu0 %v350_v39  ;;  %362 = vmatprep.subr.bf16.mxu1 %v451_v17 }
  0x35   :  { %352 = vmatprep.subr.bf16.mxu0 %v451_v17 }
  0x37   :  { %370 = vmatpush3.bf16.msra.mxu1 %v353_v44 }
  0x38   :  { %354 = vmatpush3.bf16.msra.mxu0 %v353_v44 }
  0x94   :  { %v63_v35 = vpop.permute.xlu0 %62  ;;  %v60_v38 = vpop.permute.xlu1 %59 }
  0x95   :  { %vm68_vm0 = vcmp.eq.s32.totalorder %v39_v34, %v63_v35  ;;  %vm67_vm4 = vcmp.eq.s32.totalorder %v39_v34, %v60_v38 }
  0x96   :  { %v267_v45 = vsel %vm68_vm0, 1.0, %v446_v1  ;;  %v266_v51 = vsel %vm67_vm4, 1.0, %v446_v1 }
  0x98   :  { %v66_v40 = vpop.permute.xlu0 %65 }
  0x99   :  { %vm69_vm1 = vcmp.eq.s32.totalorder %v39_v34, %v66_v40  ;;  %v45_v43 = vpop.permute.xlu1 %44 }
  0x9a   :  { %v268_v46 = vsel %vm69_vm1, 1.0, %v446_v1  ;;  %vm50_vm3 = vcmp.eq.s32.totalorder %v39_v34, %v45_v43 }
  0x9b   :  { %v388_v47 = vpack.i.bf16 %v268_v46, %v267_v45  ;;  %v264_v48 = vsel %vm50_vm3, 1.0, %v446_v1 }
  0x9c   :  { %78 = vst.msk [vmem:[#allocation2 + $0x8] sm:$0xff] %vm76_vm2, %v264_v48 }
  0x9d   :  { %389 = vrot.lane.b32.xlu1 %v388_v47, %s444_s26  ;;  %v42_v49 = vpop.permute.xlu1 %41  ;;  %v48_v50 = vpop.permute.xlu0 %47 }
  0x9e   :  { %vm49_vm6 = vcmp.eq.s32.totalorder %v39_v34, %v42_v49  ;;  %vm51_vm7 = vcmp.eq.s32.totalorder %v39_v34, %v48_v50 }
  0x9f   :  { %v263_v52 = vsel %vm49_vm6, 1.0, %v446_v1  ;;  %v265_v53 = vsel %vm51_vm7, 1.0, %v446_v1 }
  0xa0   :  { %77 = vst.msk [vmem:[#allocation2] sm:$0xff] %vm76_vm2, %v263_v52  ;;  %79 = vst.msk [vmem:[#allocation2 + $0x10] sm:$0xff] %vm76_vm2, %v265_v53 }
  0xa1   :  { %83 = vrot.lane.b32.xlu1 %v266_v51, %s444_s26  ;;  %v132_v54 = vpop.permute.xlu0 %131  ;;  %v136_v55 = vpop.permute.xlu1 %135 }
  0xa5   :  { %118 = vrot.lane.b32.xlu1 %v520_v16, %s448_s15  ;;  %v140_v56 = vpop.permute.xlu0 %139 }
  0xa9   :  { %v114_v60 = vpop.permute.xlu0 %113 }
  0xad   :  { %v124_v63 = vpop.permute.xlu0 %123 }
 0x10f   :  { %v390_v57 = vpop.permute.xlu1 %389 }
 0x110   :  { %v392_v58 = vunpack.i.h.bf16 %v390_v57  ;;  %v391_v59 = vunpack.i.l.bf16 %v390_v57 }
 0x112   :  { %94 = vst.msk [vmem:[#allocation2 + $0x8] sm:$0xff] %vm92_vm8, %v391_v59  ;;  %95 = vst.msk [vmem:[#allocation2 + $0x10] sm:$0xff] %vm92_vm8, %v392_v58 }
 0x113   :  { %134 = vst.msk [vmem:[#allocation2 + $0xd] sm:$0x7f] %vm116_vm9, %v132_v54  ;;  %v84_v61 = vpop.permute.xlu1 %83 }
 0x114   :  { %138 = vst.msk [vmem:[#allocation2 + $0xc] sm:$0xff] %vm121_vm10, %v136_v55 }
 0x115   :  { %93 = vst.msk [vmem:[#allocation2] sm:$0xff] %vm92_vm8, %v84_v61 }
 0x116   :  { %142 = vst.msk [vmem:[#allocation2 + $0xb] sm:$0xfe] %vm126_vm11, %v140_v56 }
 0x117   :  { %117 = vst.msk [vmem:[#allocation2 + $0x1] sm:$0x7f] %vm116_vm9, %v114_v60  ;;  %v119_v0 = vpop.permute.xlu1 %118 }
 0x118   :  { %143 = vst.msk [vmem:[#allocation2 + $0xc] sm:$0xff] %vm128_vm12, %v453_v62 }
 0x119   :  { %122 = vst.msk [vmem:[#allocation2] sm:$0xff] %vm121_vm10, %v119_v0 }
 0x11a   :  { %127 = vst.msk [vmem:[#allocation2 - $0x1] sm:$0xfe] %vm126_vm11, %v124_v63 }
 0x11b   :  { %129 = vst.msk [vmem:[#allocation2] sm:$0xff] %vm128_vm12, %v453_v62 }
 0x11f   :  { %v145_v2 = vld [vmem:[#allocation2 + $0x8] sm:$0xff]  ;;  %v146_v4 = vld [vmem:[#allocation2 + $0x10] sm:$0xff] }
 0x120   :  { %326 = vmatmul.mubr.f32.vlgmr.msra.gmra.mrb[0].mxu1 %v145_v2 }
 0x121   :  { %328 = vmatprep.mubr.msk.f32.mxu1 %vm452_vm5, %v446_v1 }
 0x122   :  { %v144_v3 = vld [vmem:[#allocation2] sm:$0xff] }
 0x123   :  { %323 = vmatmul.mubr.f32.vlgmr.msra.gmra.mrb[0].mxu0 %v144_v3 }
 0x124   :  { %329 = vmatmul.mubr.f32.gmra.mrb[2].mxu1 %v146_v4 }
 0x1f3   :  { %v234_v5 = vpop.f32.mrb[0].mxu1 }
 0x1f4   :  { %244 = vst [vmem:[#allocation6 + $0x8] sm:$0xff] %v234_v5  ;;  %v327_v6 = vpop.f32.mrb[1].mxu1 }
 0x1f6   :  { %v229_v7 = vpop.f32.mrb[0].mxu0 }
 0x1f7   :  { %v239_v8 = vpop.f32.mrb[2].mxu1  ;;  %243 = vst [vmem:[#allocation6] sm:$0xff] %v229_v7  ;;  %v324_v9 = vpop.f32.mrb[1].mxu0 }
 0x1f8   :  { %245 = vst [vmem:[#allocation6 + $0x10] sm:$0xff] %v239_v8  ;;  %v330_v10 = vpop.f32.mrb[3].mxu1 }
 0x1f9   :  { %427 = shalt.err (!%p424_p12)
}
 0x1fa   :  { %s428_s21 = scalar_lea.hbm %s562_s4, 384 }
 0x1fb   :  { %p429_p13 = scmp.ne.s32.totalorder %s562_s4, %s428_s21  ;;  %p432_p0 = scmp.lt.u32.totalorder %s428_s21, %s562_s4 }
 0x1fd   :  { %p434_p1 = pnand %p432_p0, %p429_p13 }
 0x1ff   :  { %437 = shalt.err (!%p434_p1)
}
 0x200   :  { %257 = dma.vmem_to_hbm [thread:$0]  %s252_s2, 384, %s562_s4, [#allocation5], %s443_s25, %s443_s25, %s444_s26  }
 0x201   :  { %440 = dma.done.wait [#allocation5], 384  }
 0x202   :  { %441 = vsyncadd [#allocation5], 4294966912 }
 0x203   :  { %261 = vsyncpa [#allocation4], 1 }
 0x204   :  { %262 = vsyncpa [#allocation5], 1 }

</bundles_post_ra>
